<compile_context>
chip_gen: v6e
topology: v6e:2x2x1
jax: 0.10.0
libtpu: 0.0.40
codegen_flags: <defaults>
</compile_context>

<pallas_src>
import functools

import jax
import jax.numpy as jnp
from jax.experimental import pallas as pl
from jax.experimental.pallas import tpu as pltpu


def _mlm_kernel(x_ref, w_ref, b_ref, o_ref, acc_ref):
    # x_ref: (tm, tk)  w_ref: (tk, tn)  b_ref: (1, tn) f32  o_ref: (tm, tn)
    # acc_ref: (tm, tn) f32 scratch, resident across the K (innermost) axis.
    k = pl.program_id(2)

    @pl.when(k == 0)
    def _():
        acc_ref[...] = jnp.zeros_like(acc_ref)

    acc_ref[...] += jnp.dot(x_ref[...], w_ref[...],
                            preferred_element_type=jnp.float32)

    @pl.when(k == pl.num_programs(2) - 1)
    def _():
        y = acc_ref[...] + b_ref[...].astype(jnp.float32)   # bias, f32
        y = jnp.maximum(y, 0.0)                              # relu
        o_ref[...] = jnp.log1p(y).astype(o_ref.dtype)        # log1p


def _vmem_budget_bytes():
    """Generation-aware (picker_budget, vmem_limit) in bytes."""
    cap = None
    try:
        cap = int(pltpu.get_tpu_info().vmem_capacity_bytes)
    except Exception:
        cap = None
    if cap is None or cap <= 0:
        cap = 64 * 1024 * 1024            # conservative fallback (v7x per-TC)
    # 128 MiB (v5e/v6e) -> limit 96 MiB, budget 72 MiB
    #  64 MiB (v7x)     -> limit 48 MiB, budget 36 MiB
    limit = min((cap * 3) // 4, 100 * 1024 * 1024)
    budget = (limit * 3) // 4             # ~25% headroom for Mosaic scratch
    return budget, limit


def _pick_tiles(B, D, V, in_dtype, *, budget):
    """Choose (tm, tn, tk) honoring the (8, 128) rule and the VMEM budget."""
    in_bytes = jnp.dtype(in_dtype).itemsize

    # Batch tile: whole batch when small (full-dim block is always legal).
    tm_cap = 512 if budget >= 56 * 1024 * 1024 else 256
    tm = B if B <= tm_cap else tm_cap

    # K tile: full D when modest; otherwise the largest multiple of 128 that
    # divides D (keeps the ragged-K edge exact).  If D is not 128-divisible
    # we fall back to a single K block.
    tk_max = 2048
    if D <= tk_max or D % 128 != 0:
        tk = D
    else:
        tk = tk_max
        while tk >= 128 and D % tk != 0:
            tk -= 128
        if tk < 128:
            tk = D

    # Vocab tile: lane-dense, multiple of 128 (or the full V when small).
    tn = V if V <= 2048 else 2048

    def vmem_bytes(tn_):
        return (2 * tk * tn_ * in_bytes    # weight tile, double-buffered
                + 2 * tm * tk * in_bytes   # x tile, double-buffered
                + 2 * tm * tn_ * 4         # f32 output tile, double-buffered
                + tm * tn_ * 4             # f32 accumulator scratch
                + 2 * tn_ * 4)             # bias tile

    # Shrink tn toward a 512-lane floor only (prefer the K split for size).
    floor = 512
    while (tn % 128 == 0 and tn - 128 >= floor
           and vmem_bytes(tn) > budget):
        tn -= 128
    return tm, tn, tk


@functools.partial(jax.jit, static_argnames=("tm", "tn", "tk", "vmem_limit"))
def _mlm_pallas(x, weight_t, bias2d, *, tm, tn, tk, vmem_limit):
    B, D = x.shape
    _, V = weight_t.shape

    # Grid: vocab outer (megacore split target), batch middle, K inner
    # (reduction axis innermost, accumulator resident across it).
    grid = (pl.cdiv(V, tn), pl.cdiv(B, tm), pl.cdiv(D, tk))

    return pl.pallas_call(
        _mlm_kernel,
        out_shape=jax.ShapeDtypeStruct((B, V), jnp.float32),
        grid_spec=pltpu.PrefetchScalarGridSpec(
            num_scalar_prefetch=0,
            grid=grid,
            in_specs=[
                pl.BlockSpec((tm, tk), lambda j, i, k: (i, k)),   # x tile
                pl.BlockSpec((tk, tn), lambda j, i, k: (k, j)),   # weight tile
                pl.BlockSpec((1, tn), lambda j, i, k: (0, j)),    # bias tile
            ],
            out_specs=pl.BlockSpec((tm, tn), lambda j, i, k: (i, j)),
            scratch_shapes=[pltpu.VMEM((tm, tn), jnp.float32)],
        ),
        compiler_params=pltpu.CompilerParams(
            # Only the vocab axis is "parallel": a 2-TC (v7x) split on vocab
            # gives each core a disjoint half of the weight stream.
            dimension_semantics=("parallel", "arbitrary", "arbitrary"),
            vmem_limit_bytes=vmem_limit,
        ),
    )(x, weight_t, bias2d)


def mlm_forward(dense_vec, weight_t, bias):
    """dense_vec: (B, D), weight_t: (D, V) (pre-transposed, ideally bf16),
    bias: (V,) f32  ->  (B, V) f32 = log1p(relu(x @ W + b))."""
    B, D = dense_vec.shape
    D2, V = weight_t.shape
    assert D == D2

    # Cast activations to the cached weight dtype (bf16 recommended); the
    # matmul still accumulates in f32 and the epilogue/output stay f32.
    x = dense_vec.astype(weight_t.dtype)

    budget, vmem_limit = _vmem_budget_bytes()
    tm, tn, tk = _pick_tiles(B, D, V, weight_t.dtype, budget=budget)
    return _mlm_pallas(x, weight_t, bias.reshape(1, V).astype(jnp.float32),
                       tm=tm, tn=tn, tk=tk, vmem_limit=vmem_limit)


if __name__ == "__main__":
    # Small, tile-friendly shapes: batch=8, dense_size=32, vocab_size=256.
    B, D, V = 8, 32, 256

    key = jax.random.PRNGKey(0)
    kx, kw, kb = jax.random.split(key, 3)

    # Deterministic init mimicking nn.Linear (uniform(-1/sqrt(D), 1/sqrt(D))).
    bound = 1.0 / jnp.sqrt(jnp.float32(D))
    weight = jax.random.uniform(kw, (V, D), jnp.float32, -bound, bound)  # PyTorch layout
    bias = jax.random.uniform(kb, (V,), jnp.float32, -bound, bound)
    dense_vec = jax.random.normal(kx, (B, D), jnp.float32)

    # Cache the weight ONCE: pre-transposed (D, V) and cast to bf16.
    weight_t_bf16 = jnp.asarray(weight.T, dtype=jnp.bfloat16)

    out = mlm_forward(dense_vec, weight_t_bf16, bias)
    out = jax.block_until_ready(out)
    assert out.shape == (B, V)

    # Reference 1: plain JAX with the SAME bf16 operands (tight tolerance —
    # verifies the kernel math itself).
    x_bf = dense_vec.astype(jnp.bfloat16)
    ref_bf = jnp.log1p(jnp.maximum(
        jnp.dot(x_bf, weight_t_bf16, preferred_element_type=jnp.float32)
        + bias, 0.0))
    assert jnp.allclose(out, ref_bf, atol=1e-4, rtol=1e-4), \
        "mismatch vs bf16 reference"

    # Reference 2: full-f32 PyTorch-equivalent forward (loose tolerance —
    # bounds the bf16 weight/activation rounding).
    ref_f32 = jnp.log1p(jnp.maximum(dense_vec @ weight.T + bias, 0.0))
    assert jnp.allclose(out, ref_f32, atol=3e-2, rtol=3e-2), \
        "mismatch vs f32 reference"

    print("KERNEL_OK")
</pallas_src>

<mosaic_0001>
module attributes {stable_mosaic.version = 11 : i64} {
  func.func @_mlm_kernel(%arg0: i32, %arg1: i32, %arg2: i32, %arg3: memref<8x32xbf16, #tpu.memory_space<vmem>>, %arg4: memref<32x256xbf16, #tpu.memory_space<vmem>>, %arg5: memref<1x256xf32, #tpu.memory_space<vmem>>, %arg6: memref<8x256xf32, #tpu.memory_space<vmem>>, %arg7: memref<8x256xf32, #tpu.memory_space<vmem>>) attributes {dimension_semantics = [#tpu.dimension_semantics<parallel>, #tpu.dimension_semantics<arbitrary>, #tpu.dimension_semantics<arbitrary>], iteration_bounds = array<i64: 1, 1, 1>, scalar_prefetch = 0 : i64, scratch_operands = 1 : i64, tpu.core_type = #tpu.core_type<tc>, window_params = [{transform_indices = @transform_0, window_bounds = array<i64: 8, 32>}, {transform_indices = @transform_1, window_bounds = array<i64: 32, 256>}, {transform_indices = @transform_2, window_bounds = array<i64: 1, 256>}, {transform_indices = @transform_3, window_bounds = array<i64: 8, 256>}]} {
    %c0_i32 = arith.constant 0 : i32
    %0 = arith.cmpi eq, %arg2, %c0_i32 : i32
    %1 = arith.extui %0 : i1 to i32
    %c0_i32_0 = arith.constant 0 : i32
    %2 = arith.cmpi ne, %1, %c0_i32_0 : i32
    scf.if %2 {
      %cst_10 = arith.constant 0.000000e+00 : f32
      %12 = vector.broadcast %cst_10 : f32 to vector<8x256xf32>
      %c0_11 = arith.constant 0 : index
      %c0_12 = arith.constant 0 : index
      %13 = vector.load %arg7[%c0_11, %c0_12] : memref<8x256xf32, #tpu.memory_space<vmem>>, vector<8x256xf32>
      tpu.vector_store %arg7[%c0_11, %c0_12], %12 {strides = array<i32>} : memref<8x256xf32, #tpu.memory_space<vmem>>, vector<8x256xf32>,
    } else {
    }
    %c0 = arith.constant 0 : index
    %c0_1 = arith.constant 0 : index
    %3 = vector.load %arg7[%c0, %c0_1] : memref<8x256xf32, #tpu.memory_space<vmem>>, vector<8x256xf32>
    %c0_2 = arith.constant 0 : index
    %c0_3 = arith.constant 0 : index
    %4 = vector.load %arg3[%c0_2, %c0_3] : memref<8x32xbf16, #tpu.memory_space<vmem>>, vector<8x32xbf16>
    %c0_4 = arith.constant 0 : index
    %c0_5 = arith.constant 0 : index
    %5 = vector.load %arg4[%c0_4, %c0_5] : memref<32x256xbf16, #tpu.memory_space<vmem>>, vector<32x256xbf16>
    %cst = arith.constant dense<0.000000e+00> : vector<8x256xf32>
    %6 = tpu.matmul %4, %5, %cst {dimension_numbers = #tpu.dot_dimension_numbers<[1], [0], [0], [1], [0, 0, 1, 1], [], []>} : vector<8x32xbf16>, vector<32x256xbf16>, vector<8x256xf32> -> vector<8x256xf32>
    %7 = arith.addf %3, %6 : vector<8x256xf32>
    %c0_6 = arith.constant 0 : index
    %c0_7 = arith.constant 0 : index
    %8 = vector.load %arg7[%c0_6, %c0_7] : memref<8x256xf32, #tpu.memory_space<vmem>>, vector<8x256xf32>
    tpu.vector_store %arg7[%c0_6, %c0_7], %7 {strides = array<i32>} : memref<8x256xf32, #tpu.memory_space<vmem>>, vector<8x256xf32>,
    %c0_i32_8 = arith.constant 0 : i32
    %9 = arith.cmpi eq, %arg2, %c0_i32_8 : i32
    %10 = arith.extui %9 : i1 to i32
    %c0_i32_9 = arith.constant 0 : i32
    %11 = arith.cmpi ne, %10, %c0_i32_9 : i32
    scf.if %11 {
      %c0_10 = arith.constant 0 : index
      %c0_11 = arith.constant 0 : index
      %12 = vector.load %arg7[%c0_10, %c0_11] : memref<8x256xf32, #tpu.memory_space<vmem>>, vector<8x256xf32>
      %c0_12 = arith.constant 0 : index
      %c0_13 = arith.constant 0 : index
      %13 = vector.load %arg5[%c0_12, %c0_13] : memref<1x256xf32, #tpu.memory_space<vmem>>, vector<1x256xf32>
      %14 = vector.broadcast %13 : vector<1x256xf32> to vector<8x256xf32>
      %15 = arith.addf %12, %14 : vector<8x256xf32>
      %cst_14 = arith.constant 0.000000e+00 : f32
      %16 = vector.broadcast %cst_14 : f32 to vector<8x256xf32>
      %17 = arith.maximumf %15, %16 : vector<8x256xf32>
      %18 = math.log1p %17 : vector<8x256xf32>
      %c0_15 = arith.constant 0 : index
      %c0_16 = arith.constant 0 : index
      %19 = vector.load %arg6[%c0_15, %c0_16] : memref<8x256xf32, #tpu.memory_space<vmem>>, vector<8x256xf32>
      tpu.vector_store %arg6[%c0_15, %c0_16], %18 {strides = array<i32>} : memref<8x256xf32, #tpu.memory_space<vmem>>, vector<8x256xf32>,
    } else {
    }
    return
  }
  func.func @transform_0(%arg0: i32, %arg1: i32, %arg2: i32) -> (i32, i32) {
    %c0_i32 = arith.constant 0 : i32
    return %arg1, %arg2 : i32, i32
  }
  func.func @transform_1(%arg0: i32, %arg1: i32, %arg2: i32) -> (i32, i32) {
    %c0_i32 = arith.constant 0 : i32
    return %arg2, %arg0 : i32, i32
  }
  func.func @transform_2(%arg0: i32, %arg1: i32, %arg2: i32) -> (i32, i32) {
    %c0_i32 = arith.constant 0 : i32
    %c0_i32_0 = arith.constant 0 : i32
    return %c0_i32, %arg0 : i32, i32
  }
  func.func @transform_3(%arg0: i32, %arg1: i32, %arg2: i32) -> (i32, i32) {
    %c0_i32 = arith.constant 0 : i32
    return %arg1, %arg0 : i32, i32
  }
}

</mosaic_0001>

<bundles_post_ra>
// kernel: _mlm_pallas.1
= control target key start
LH: loop header
LB: loop body
LE: loop exit
PB: predicated region body
PF: predicated region fallthrough
CT: control target
= control target key end

     0   :  { %8 = vsyncpa [#allocation4], 0  ;;  %s306_s0 = inlined_call_operand.hbm [shape: bf16[8,32], index: 0, kind: input, shape index: {}]   ;;  %s307_s1 = inlined_call_operand.hbm [shape: bf16[32,256], index: 1, kind: input, shape index: {}]   ;;  %s308_s2 = inlined_call_operand.vmem [shape: f32[1,256], index: 2, kind: input, shape index: {}]   ;;  %s309_s3 = inlined_call_operand.hbm [shape: f32[8,256], index: 3, kind: output, shape index: {}]  }
   0x1   :  { %9 = vsyncpa [#allocation7], 0 }
   0x2   :  { %10 = vsyncpa [#allocation5], 0  ;;  %s268_s12 = smov [#allocation3]   ;;  %s269_s14 = smov [#allocation6]  }
   0x3   :  { %s17_s13 = sshll.u32 %s268_s12, 4  ;;  %s26_s15 = sshll.u32 %s269_s14, 4  ;;  %s18_s13 = int_to_ptr.vmem [resolvable:$true] %s17_s13  ;;  %s27_s15 = int_to_ptr.vmem [resolvable:$true] %s26_s15 }
   0x4   :  { %s210_s16 = scalar_lea.vmem %s18_s13, 64  ;;  %p215_p1 = scmp.lt.s32.totalorder %s18_s13, %s18_s13 }
   0x5   :  { %p211_p0 = scmp.ne.s32.totalorder %s18_s13, %s210_s16  ;;  %p216_p2 = scmp.lt.s32.totalorder %s210_s16, %s210_s16 }
   0x7   :  { %p217_p3 = por %p216_p2, %p215_p1 }
   0x9   :  { %p218_p4 = pnand %p217_p3, %p211_p0 }
   0xb   :  { %221 = shalt.err (!%p218_p4)
}
   0xc   :  { %20 = dma.hbm_to_vmem [thread:$0]  %s306_s0, 64, %s18_s13, [#allocation4]  }
   0xd   :  { %s230_s19 = scalar_lea.vmem %s27_s15, 512  ;;  %p235_p6 = scmp.lt.s32.totalorder %s27_s15, %s27_s15 }
   0xe   :  { %p231_p5 = scmp.ne.s32.totalorder %s27_s15, %s230_s19  ;;  %p236_p7 = scmp.lt.s32.totalorder %s230_s19, %s230_s19 }
  0x10   :  { %p237_p8 = por %p236_p7, %p235_p6 }
  0x12   :  { %p238_p9 = pnand %p237_p8, %p231_p5 }
  0x14   :  { %241 = shalt.err (!%p238_p9)
}
  0x15   :  { %s270_s20 = smov 128   ;;  %s271_s21 = smov 8  }
  0x16   :  { %32 = dma.hbm_to_vmem [thread:$0]  %s307_s1, 512, %s27_s15, [#allocation7], %s270_s20, %s270_s20, %s271_s21  }
  0x17   :  { %262 = dma.done.wait [#allocation4], 64  }
  0x18   :  { %263 = vsyncadd [#allocation4], 4294967232 }
  0x19   :  { %264 = dma.done.wait [#allocation7], 512  }
  0x1a   :  { %265 = vsyncadd [#allocation7], 4294966784  ;;  %v272_v0 = vmov 0   ;;  %v192_v1 = vld [vmem:[#allocation6 + $0x14] ss:$8 sps:$4 sm:$0xff]   ;;  %vm75_vm0 = vcmask 261120   ;;  %v131_v6 = vlaneseq }
  0x1b   :  { %111 = vmatprep.mubr.bf16.mxu0 %v272_v0  ;;  %v194_v2 = vld [vmem:[#allocation6 + $0x10] ss:$8 sps:$4 sm:$0xff]   ;;  %91 = vmatprep.subr.bf16.mxu0 %v192_v1  ;;  %v195_v3 = vld [vmem:[#allocation6 + $0x4] ss:$8 sps:$4 sm:$0xff]   ;;  %v197_v4 = vld [vmem:[#allocation6] ss:$8 sps:$4 sm:$0xff]  }
  0x1c   :  { %92 = vmatpush1.bf16.msra.mxu0 %v194_v2  ;;  %v50_v5 = vld [vmem:[#allocation3] sm:$0xf]  ;;  %v132_v7 = vshrl.u32 %v131_v6, 7 }
  0x1d   :  { %93 = vmatprep.subr.bf16.mxu0 %v195_v3  ;;  %v129_v9 = vld [vmem:[%s308_s2] sm:$0x3]  ;;  %s273_s2 = smov [#allocation8]  }
  0x1e   :  { %v133_v8 = vsub.s32 0, %v132_v7  ;;  %v137_v10 = vsub.s32 1, %v132_v7  ;;  %s171_s24 = sshll.u32 %s273_s2, 4  ;;  %s172_s24 = int_to_ptr.vmem [resolvable:$true] %s171_s24 }
  0x1f   :  { %s242_s25 = scalar_lea.vmem %s172_s24, 256  ;;  %p247_p11 = scmp.lt.s32.totalorder %s172_s24, %s172_s24 }
  0x20   :  { %94 = vmatpush1.bf16.msra.mxu0 %v197_v4  ;;  %v134_v11 = vrot.slane %v129_v9, %v133_v8  ;;  %v138_v12 = vrot.slane %v129_v9, %v137_v10  ;;  %p243_p10 = scmp.ne.s32.totalorder %s172_s24, %s242_s25  ;;  %p248_p12 = scmp.lt.s32.totalorder %s242_s25, %s242_s25 }
  0x22   :  { %p249_p13 = por %p248_p12, %p247_p11 }
  0x23   :  { %185 = vmatmul.mubr.msk.bf16.vlgmr.msra.gmra.mxu0 %vm75_vm0, %v50_v5 }
  0x24   :  { %p250_p0 = pnand %p249_p13, %p243_p10 }
  0xe3   :  { %v113_v13 = vpop.f32.mrf.mxu0 }
  0xe4   :  { %v141_v14 = vadd.f32 %v134_v11, %v113_v13 }
  0xe5   :  { %v115_v15 = vpop.f32.mrf.mxu0 }
  0xe6   :  { %v143_v16 = vmax.f32 %v141_v14, 0.0  ;;  %v142_v17 = vadd.f32 %v138_v12, %v115_v15 }
  0xe7   :  { %v117_v18 = vpop.f32.mrf.mxu0 }
  0xe8   :  { %v145_v19 = vadd.f32 1.0, %v143_v16  ;;  %v144_v20 = vmax.f32 %v142_v17, 0.0  ;;  %v148_v23 = vmul.f32 -0.5, %v143_v16  ;;  %v151_v26 = vand.u32 2147483647, %v143_v16 }
  0xe9   :  { %v118_v21 = vpop.f32.mrf.mxu0 }
  0xea   :  { %198 = vlog2.f32 %v145_v19  ;;  %v154_v22 = vadd.f32 1.0, %v144_v20  ;;  %v157_v24 = vmul.f32 -0.5, %v144_v20  ;;  %v149_v25 = vadd.f32 1.0, %v148_v23 }
  0xeb   :  { %v160_v29 = vand.u32 2147483647, %v144_v20  ;;  %vm152_vm1 = vcmp.lt.f32.partialorder %v151_v26, 0.0004427343 }
  0xec   :  { %200 = vlog2.f32 %v154_v22  ;;  %v158_v27 = vadd.f32 1.0, %v157_v24  ;;  %v150_v31 = vmul.f32 %v149_v25, %v143_v16 }
  0xed   :  { %vm161_vm2 = vcmp.lt.f32.partialorder %v160_v29, 0.0004427343 }
  0xee   :  { %v159_v35 = vmul.f32 %v158_v27, %v144_v20 }
  0xf7   :  { %v199_v28 = vpop.eup %198 }
  0xf8   :  { %v147_v30 = vmul.f32 0.6931472, %v199_v28 }
  0xf9   :  { %v201_v32 = vpop.eup %200 }
  0xfa   :  { %v153_v33 = vsel %vm152_vm1, %v150_v31, %v147_v30  ;;  %v156_v34 = vmul.f32 0.6931472, %v201_v32 }
  0xfb   :  { %163 = vst [vmem:[#allocation8] sm:$0xff] %v153_v33 }
  0xfc   :  { %v162_v36 = vsel %vm161_vm2, %v159_v35, %v156_v34 }
  0xfd   :  { %164 = vst [vmem:[#allocation8 + $0x8] sm:$0xff] %v162_v36 }
  0xfe   :  { %253 = shalt.err (!%p250_p0)
}
  0xff   :  { %174 = dma.vmem_to_hbm [thread:$0]  %s172_s24, 256, %s309_s3, [#allocation5]  }
 0x100   :  { %266 = dma.done.wait [#allocation5], 256  }
 0x101   :  { %267 = vsyncadd [#allocation5], 4294967040 }
 0x102   :  { %178 = vsyncpa [#allocation4], 1 }
 0x103   :  { %179 = vsyncpa [#allocation7], 1 }
 0x104   :  { %180 = vsyncpa [#allocation5], 1 }

</bundles_post_ra>
